<compile_context>
chip_gen: v7x
topology: tpu7x:2x2x1
jax: 0.10.0
libtpu: 0.0.40
codegen_flags: <defaults>
</compile_context>

<pallas_src>
import jax
import jax.numpy as jnp
from jax.experimental import pallas as pl
from jax.experimental.pallas import tpu as pltpu

LANE = 128


def dpcnn_forward(ids, emb_table, w_region, b_region, w_conv, b_conv, w_fc, b_fc):
    B, L = ids.shape
    V, E = emb_table.shape
    F = int(b_region.shape[0])
    C = int(b_fc.shape[0])
    assert E <= LANE and F <= LANE and C <= LANE

    H0 = L - 2                          # height entering the while loop
    # The reference while-loop runs exactly once and the fc only type-checks when
    # the pooled height is 1, i.e. H0 == 3 (seq_len == 5).
    if H0 != 3:
        # TODO(synk): other sequence lengths (loop count != 1) not implemented.
        raise NotImplementedError("only seq_len == 5 (H0 == 3, Hp == 1) is supported")

    # ---- glue: pack all parameters into one 128-lane slab (single DMA) -------
    wr_s = jnp.transpose(w_region[:, 0, :, :], (1, 2, 0)).reshape(3 * E, F)  # (3E, F) tap-major
    wc_s = jnp.transpose(w_conv[:, :, :, 0], (2, 1, 0)).reshape(3 * F, F)    # (3F, F) tap-major
    wf_t = jnp.transpose(w_fc)                                               # (F, C)

    def lane_pad(a):
        return jnp.pad(a.astype(jnp.float32), ((0, 0), (0, LANE - a.shape[1])))

    bias_blk = jnp.zeros((8, LANE), jnp.float32)
    bias_blk = bias_blk.at[0, :F].set(b_region.astype(jnp.float32))
    bias_blk = bias_blk.at[1, :F].set(b_conv.astype(jnp.float32))
    bias_blk = bias_blk.at[2, :C].set(b_fc.astype(jnp.float32))

    R_EMB = 0                           # embedding first so gather row == token id
    R_WR = R_EMB + V
    R_WC = R_WR + 3 * E
    R_WF = R_WC + 3 * F
    R_B = R_WF + F
    n_rows = R_B + 8

    slab = jnp.concatenate(
        [lane_pad(emb_table), lane_pad(wr_s), lane_pad(wc_s), lane_pad(wf_t), bias_blk],
        axis=0)                                                              # (n_rows, 128)

    # Only batch element 0 feeds the output (the reference `_block` takes x[0]).
    ids0 = ids[0].astype(jnp.int32)     # (L,) -> SMEM via scalar prefetch

    # ---- kernel ---------------------------------------------------------------
    def kernel(ids_ref, slab_ref, o_ref):
        f32 = jnp.float32

        wr = slab_ref[R_WR:R_WR + 3 * E, 0:F]                # (3E, F)
        wc = slab_ref[R_WC:R_WC + 3 * F, 0:F]                # (3F, F)
        wc_mid = slab_ref[R_WC + F:R_WC + 2 * F, 0:F]        # middle tap (h == 1 path)
        wf = slab_ref[R_WF:R_WF + F, :]                      # (F, 128)
        br = slab_ref[R_B:R_B + 1, 0:F]
        bc = slab_ref[R_B + 1:R_B + 2, 0:F]
        bf = slab_ref[R_B + 2:R_B + 3, :]

        # embedding lookup (batch 0 only): L unrolled dynamic row loads from the
        # VMEM slab, indexed by the scalar-prefetched ids in SMEM.  Plain lookup
        # matches nn.Embedding forward semantics (padding_idx only affects grads).
        rows = [slab_ref[pl.ds(ids_ref[i], 1), :] for i in range(L)]   # each (1, 128)
        emb = jnp.concatenate(rows, axis=0)[:, 0:E]                    # (L, E)

        # conv_region: 3 taps fused into one K=3E matmul (im2col along lanes)
        x_im = jnp.concatenate([emb[0:H0], emb[1:H0 + 1], emb[2:H0 + 2]], axis=1)
        x = jnp.dot(x_im, wr, preferred_element_type=f32) + br         # (3, F)

        zrow = jnp.zeros((1, F), f32)

        def conv_block3(t):
            # padding1 -> relu -> Conv2d(F, F, (3,1)) on a 3-row input,
            # fused into a single K=3F matmul (padding folded in; relu(0)=0).
            rp = jnp.concatenate([zrow, jnp.maximum(t, 0.0), zrow], axis=0)   # (5, F)
            im = jnp.concatenate([rp[0:3], rp[1:4], rp[2:5]], axis=1)         # (3, 3F)
            return jnp.dot(im, wc, preferred_element_type=f32) + bc

        x = conv_block3(x)
        x = conv_block3(x)                                   # (3, F)

        # _block (runs exactly once): with H0 == 3 the padding2 zero row is
        # outside the single MaxPool2d((3,1),2) window -> pool over x directly.
        px = jnp.max(x, axis=0, keepdims=True)               # (1, F)

        # h == 1 conv blocks: padding1 puts zeros in the outer taps, so only the
        # middle-tap weights contribute (K = F instead of 3F, no im2col assembly).
        y = jnp.dot(jnp.maximum(px, 0.0), wc_mid, preferred_element_type=f32) + bc
        y = jnp.dot(jnp.maximum(y, 0.0), wc_mid, preferred_element_type=f32) + bc
        x = y + px                                           # (1, F)

        # squeeze + fc; weight/bias lane-padded to 128 so the store is lane-dense
        row = jnp.dot(x, wf, preferred_element_type=f32) + bf          # (1, 128)
        o_ref[...] = jnp.broadcast_to(row, (8, LANE))

    cost = pl.CostEstimate(
        flops=2 * (H0 * 3 * E * F + 2 * H0 * 3 * F * F + 2 * F * F + F * C),
        transcendentals=0,
        bytes_accessed=4 * (n_rows * LANE + 8 * LANE) + 4 * L)

    out = pl.pallas_call(
        kernel,
        out_shape=jax.ShapeDtypeStruct((8, LANE), jnp.float32),
        grid_spec=pltpu.PrefetchScalarGridSpec(
            num_scalar_prefetch=1,
            grid=(1,),
            in_specs=[pl.BlockSpec(memory_space=pltpu.MemorySpace.VMEM)],
            out_specs=pl.BlockSpec(memory_space=pltpu.MemorySpace.VMEM)),
        compiler_params=pltpu.CompilerParams(dimension_semantics=("arbitrary",)),
        cost_estimate=cost,
    )(ids0, slab)
    return out[0, :C]


def torch_reference(ids, emb_table, w_region, b_region, w_conv, b_conv, w_fc, b_fc):
    """Pure-JAX mirror of the PyTorch forward (NCHW / OIHW), for verification."""
    dn = ("NCHW", "OIHW", "NCHW")
    hp = jax.lax.Precision.HIGHEST

    def conv2d(x, w, b):
        y = jax.lax.conv_general_dilated(x, w, (1, 1), "VALID",
                                         dimension_numbers=dn, precision=hp)
        return y + b[None, :, None, None]

    relu = jax.nn.relu
    emb = jnp.take(emb_table, ids, axis=0)                  # (B, L, E)
    x = emb[:, None, :, :]                                  # (B, 1, L, E)
    x = conv2d(x, w_region, b_region)                       # (B, F, L-2, 1)
    pad1_4 = lambda t: jnp.pad(t, ((0, 0), (0, 0), (1, 1), (0, 0)))
    x = conv2d(relu(pad1_4(x)), w_conv, b_conv)
    x = conv2d(relu(pad1_4(x)), w_conv, b_conv)             # (B, F, L-2, 1)

    # while loop: runs once, on batch element 0 only (x[0] in the reference)
    x0 = x[0]                                               # (F, H0, 1)
    xp = jnp.pad(x0, ((0, 0), (0, 1), (0, 0)))              # padding2
    px = jnp.max(xp[:, 0:3, :], axis=1, keepdims=True)      # (F, 1, 1)
    pad1_3 = lambda t: jnp.pad(t, ((0, 0), (1, 1), (0, 0)))
    y = conv2d(relu(pad1_3(px))[None], w_conv, b_conv)[0]
    y = conv2d(relu(pad1_3(y))[None], w_conv, b_conv)[0]
    x = y + px                                              # (F, 1, 1)
    feat = x.reshape(-1)                                    # squeeze -> (F,)
    return feat @ w_fc.T + b_fc                             # (C,)


if __name__ == "__main__":
    # config: n_vocab=64, embed=32, num_filters=32, num_classes=8, seq_len=5, batch=2
    B, L = 2, 5
    V, E = 64, 32
    F, C = 32, 8

    key = jax.random.PRNGKey(0)
    k_ids, k_emb, k_wr, k_br, k_wc, k_bc, k_wf, k_bf = jax.random.split(key, 8)

    ids = jax.random.randint(k_ids, (B, L), 0, V, dtype=jnp.int32)
    emb_table = 0.1 * jax.random.normal(k_emb, (V, E), jnp.float32)
    emb_table = emb_table.at[0].set(0.0)                    # padding_idx=0
    w_region = 0.1 * jax.random.normal(k_wr, (F, 1, 3, E), jnp.float32)
    b_region = 0.1 * jax.random.normal(k_br, (F,), jnp.float32)
    w_conv = 0.1 * jax.random.normal(k_wc, (F, F, 3, 1), jnp.float32)
    b_conv = 0.1 * jax.random.normal(k_bc, (F,), jnp.float32)
    w_fc = 0.1 * jax.random.normal(k_wf, (C, F), jnp.float32)
    b_fc = 0.1 * jax.random.normal(k_bf, (C,), jnp.float32)

    out = jax.jit(dpcnn_forward)(ids, emb_table, w_region, b_region,
                                 w_conv, b_conv, w_fc, b_fc)
    out = jax.block_until_ready(out)

    ref = torch_reference(ids, emb_table, w_region, b_region,
                          w_conv, b_conv, w_fc, b_fc)
    assert out.shape == (C,), out.shape
    assert jnp.allclose(out, ref, rtol=1e-3, atol=1e-4), (out, ref)
    print("KERNEL_OK")
</pallas_src>

<mosaic_0001>
module attributes {stable_mosaic.version = 11 : i64} {
  func.func @kernel(%arg0: i32, %arg1: memref<5xi32, #tpu.memory_space<smem>>, %arg2: memref<296x128xf32, #tpu.memory_space<vmem>>, %arg3: memref<8x128xf32, #tpu.memory_space<vmem>>) attributes {dimension_semantics = [#tpu.dimension_semantics<arbitrary>], iteration_bounds = array<i64: 1>, scalar_prefetch = 1 : i64, scratch_operands = 0 : i64, tpu.core_type = #tpu.core_type<tc>, window_params = [{pipeline_mode = #tpu.pipeline_mode<synchronous>, transform_indices = @transform_0, window_bounds = array<i64: 296, 128>}, {pipeline_mode = #tpu.pipeline_mode<synchronous>, transform_indices = @transform_1, window_bounds = array<i64: 8, 128>}]} {
    %c64 = arith.constant 64 : index
    %c0 = arith.constant 0 : index
    %0 = vector.load %arg2[%c64, %c0] : memref<296x128xf32, #tpu.memory_space<vmem>>, vector<96x32xf32>
    %c160 = arith.constant 160 : index
    %c0_0 = arith.constant 0 : index
    %1 = vector.load %arg2[%c160, %c0_0] : memref<296x128xf32, #tpu.memory_space<vmem>>, vector<96x32xf32>
    %c192 = arith.constant 192 : index
    %c0_1 = arith.constant 0 : index
    %2 = vector.load %arg2[%c192, %c0_1] : memref<296x128xf32, #tpu.memory_space<vmem>>, vector<32x32xf32>
    %c256 = arith.constant 256 : index
    %c0_2 = arith.constant 0 : index
    %3 = vector.load %arg2[%c256, %c0_2] : memref<296x128xf32, #tpu.memory_space<vmem>>, vector<32x128xf32>
    %c288 = arith.constant 288 : index
    %c0_3 = arith.constant 0 : index
    %4 = vector.load %arg2[%c288, %c0_3] : memref<296x128xf32, #tpu.memory_space<vmem>>, vector<1x32xf32>
    %c289 = arith.constant 289 : index
    %c0_4 = arith.constant 0 : index
    %5 = vector.load %arg2[%c289, %c0_4] : memref<296x128xf32, #tpu.memory_space<vmem>>, vector<1x32xf32>
    %c290 = arith.constant 290 : index
    %c0_5 = arith.constant 0 : index
    %6 = vector.load %arg2[%c290, %c0_5] : memref<296x128xf32, #tpu.memory_space<vmem>>, vector<1x128xf32>
    %c0_6 = arith.constant 0 : index
    %7 = memref.load %arg1[%c0_6] : memref<5xi32, #tpu.memory_space<smem>>
    %8 = arith.index_cast %7 : i32 to index
    %c0_7 = arith.constant 0 : index
    %9 = vector.load %arg2[%8, %c0_7] : memref<296x128xf32, #tpu.memory_space<vmem>>, vector<1x128xf32>
    %c1 = arith.constant 1 : index
    %10 = memref.load %arg1[%c1] : memref<5xi32, #tpu.memory_space<smem>>
    %11 = arith.index_cast %10 : i32 to index
    %c0_8 = arith.constant 0 : index
    %12 = vector.load %arg2[%11, %c0_8] : memref<296x128xf32, #tpu.memory_space<vmem>>, vector<1x128xf32>
    %c2 = arith.constant 2 : index
    %13 = memref.load %arg1[%c2] : memref<5xi32, #tpu.memory_space<smem>>
    %14 = arith.index_cast %13 : i32 to index
    %c0_9 = arith.constant 0 : index
    %15 = vector.load %arg2[%14, %c0_9] : memref<296x128xf32, #tpu.memory_space<vmem>>, vector<1x128xf32>
    %c3 = arith.constant 3 : index
    %16 = memref.load %arg1[%c3] : memref<5xi32, #tpu.memory_space<smem>>
    %17 = arith.index_cast %16 : i32 to index
    %c0_10 = arith.constant 0 : index
    %18 = vector.load %arg2[%17, %c0_10] : memref<296x128xf32, #tpu.memory_space<vmem>>, vector<1x128xf32>
    %c4 = arith.constant 4 : index
    %19 = memref.load %arg1[%c4] : memref<5xi32, #tpu.memory_space<smem>>
    %20 = arith.index_cast %19 : i32 to index
    %c0_11 = arith.constant 0 : index
    %21 = vector.load %arg2[%20, %c0_11] : memref<296x128xf32, #tpu.memory_space<vmem>>, vector<1x128xf32>
    %22 = tpu.concatenate %9, %12, %15, %18, %21 in 0 : vector<1x128xf32>, vector<1x128xf32>, vector<1x128xf32>, vector<1x128xf32>, vector<1x128xf32> -> vector<5x128xf32>
    %23 = vector.extract_strided_slice %22 {offsets = [0, 0], sizes = [5, 32], strides = [1, 1]} : vector<5x128xf32> to vector<5x32xf32>
    %24 = vector.extract_strided_slice %23 {offsets = [0, 0], sizes = [3, 32], strides = [1, 1]} : vector<5x32xf32> to vector<3x32xf32>
    %25 = vector.extract_strided_slice %23 {offsets = [1, 0], sizes = [3, 32], strides = [1, 1]} : vector<5x32xf32> to vector<3x32xf32>
    %26 = vector.extract_strided_slice %23 {offsets = [2, 0], sizes = [3, 32], strides = [1, 1]} : vector<5x32xf32> to vector<3x32xf32>
    %27 = tpu.concatenate %24, %25, %26 in 1 : vector<3x32xf32>, vector<3x32xf32>, vector<3x32xf32> -> vector<3x96xf32>
    %cst = arith.constant dense<0.000000e+00> : vector<3x32xf32>
    %28 = tpu.matmul %27, %0, %cst {dimension_numbers = #tpu.dot_dimension_numbers<[1], [0], [0], [1], [0, 0, 1, 1], [], []>} : vector<3x96xf32>, vector<96x32xf32>, vector<3x32xf32> -> vector<3x32xf32>
    %29 = vector.broadcast %4 : vector<1x32xf32> to vector<3x32xf32>
    %30 = arith.addf %28, %29 : vector<3x32xf32>
    %cst_12 = arith.constant 0.000000e+00 : f32
    %31 = vector.broadcast %cst_12 : f32 to vector<1x32xf32>
    %cst_13 = arith.constant 0.000000e+00 : f32
    %32 = vector.broadcast %cst_13 : f32 to vector<3x32xf32>
    %33 = arith.maximumf %30, %32 : vector<3x32xf32>
    %34 = tpu.concatenate %31, %33, %31 in 0 : vector<1x32xf32>, vector<3x32xf32>, vector<1x32xf32> -> vector<5x32xf32>
    %35 = vector.extract_strided_slice %34 {offsets = [0, 0], sizes = [3, 32], strides = [1, 1]} : vector<5x32xf32> to vector<3x32xf32>
    %36 = vector.extract_strided_slice %34 {offsets = [1, 0], sizes = [3, 32], strides = [1, 1]} : vector<5x32xf32> to vector<3x32xf32>
    %37 = vector.extract_strided_slice %34 {offsets = [2, 0], sizes = [3, 32], strides = [1, 1]} : vector<5x32xf32> to vector<3x32xf32>
    %38 = tpu.concatenate %35, %36, %37 in 1 : vector<3x32xf32>, vector<3x32xf32>, vector<3x32xf32> -> vector<3x96xf32>
    %cst_14 = arith.constant dense<0.000000e+00> : vector<3x32xf32>
    %39 = tpu.matmul %38, %1, %cst_14 {dimension_numbers = #tpu.dot_dimension_numbers<[1], [0], [0], [1], [0, 0, 1, 1], [], []>} : vector<3x96xf32>, vector<96x32xf32>, vector<3x32xf32> -> vector<3x32xf32>
    %40 = vector.broadcast %5 : vector<1x32xf32> to vector<3x32xf32>
    %41 = arith.addf %39, %40 : vector<3x32xf32>
    %cst_15 = arith.constant 0.000000e+00 : f32
    %42 = vector.broadcast %cst_15 : f32 to vector<3x32xf32>
    %43 = arith.maximumf %41, %42 : vector<3x32xf32>
    %44 = tpu.concatenate %31, %43, %31 in 0 : vector<1x32xf32>, vector<3x32xf32>, vector<1x32xf32> -> vector<5x32xf32>
    %45 = vector.extract_strided_slice %44 {offsets = [0, 0], sizes = [3, 32], strides = [1, 1]} : vector<5x32xf32> to vector<3x32xf32>
    %46 = vector.extract_strided_slice %44 {offsets = [1, 0], sizes = [3, 32], strides = [1, 1]} : vector<5x32xf32> to vector<3x32xf32>
    %47 = vector.extract_strided_slice %44 {offsets = [2, 0], sizes = [3, 32], strides = [1, 1]} : vector<5x32xf32> to vector<3x32xf32>
    %48 = tpu.concatenate %45, %46, %47 in 1 : vector<3x32xf32>, vector<3x32xf32>, vector<3x32xf32> -> vector<3x96xf32>
    %cst_16 = arith.constant dense<0.000000e+00> : vector<3x32xf32>
    %49 = tpu.matmul %48, %1, %cst_16 {dimension_numbers = #tpu.dot_dimension_numbers<[1], [0], [0], [1], [0, 0, 1, 1], [], []>} : vector<3x96xf32>, vector<96x32xf32>, vector<3x32xf32> -> vector<3x32xf32>
    %50 = vector.broadcast %5 : vector<1x32xf32> to vector<3x32xf32>
    %51 = arith.addf %49, %50 : vector<3x32xf32>
    %cst_17 = arith.constant dense<0xFF800000> : vector<32xf32>
    %52 = vector.multi_reduction <maximumf>, %51, %cst_17 [0] : vector<3x32xf32> to vector<32xf32>
    %53 = vector.shape_cast %52 : vector<32xf32> to vector<1x32xf32>
    %cst_18 = arith.constant 0.000000e+00 : f32
    %54 = vector.broadcast %cst_18 : f32 to vector<1x32xf32>
    %55 = arith.maximumf %53, %54 : vector<1x32xf32>
    %cst_19 = arith.constant dense<0.000000e+00> : vector<1x32xf32>
    %56 = tpu.matmul %55, %2, %cst_19 {dimension_numbers = #tpu.dot_dimension_numbers<[1], [0], [0], [1], [0, 0, 1, 1], [], []>} : vector<1x32xf32>, vector<32x32xf32>, vector<1x32xf32> -> vector<1x32xf32>
    %57 = arith.addf %56, %5 : vector<1x32xf32>
    %cst_20 = arith.constant 0.000000e+00 : f32
    %58 = vector.broadcast %cst_20 : f32 to vector<1x32xf32>
    %59 = arith.maximumf %57, %58 : vector<1x32xf32>
    %cst_21 = arith.constant dense<0.000000e+00> : vector<1x32xf32>
    %60 = tpu.matmul %59, %2, %cst_21 {dimension_numbers = #tpu.dot_dimension_numbers<[1], [0], [0], [1], [0, 0, 1, 1], [], []>} : vector<1x32xf32>, vector<32x32xf32>, vector<1x32xf32> -> vector<1x32xf32>
    %61 = arith.addf %60, %5 : vector<1x32xf32>
    %62 = arith.addf %61, %53 : vector<1x32xf32>
    %cst_22 = arith.constant dense<0.000000e+00> : vector<1x128xf32>
    %63 = tpu.matmul %62, %3, %cst_22 {dimension_numbers = #tpu.dot_dimension_numbers<[1], [0], [0], [1], [0, 0, 1, 1], [], []>} : vector<1x32xf32>, vector<32x128xf32>, vector<1x128xf32> -> vector<1x128xf32>
    %64 = arith.addf %63, %6 : vector<1x128xf32>
    %65 = vector.shape_cast %64 : vector<1x128xf32> to vector<1x128xf32>
    %66 = vector.broadcast %65 : vector<1x128xf32> to vector<8x128xf32>
    %c0_23 = arith.constant 0 : index
    %c0_24 = arith.constant 0 : index
    %67 = vector.load %arg3[%c0_23, %c0_24] : memref<8x128xf32, #tpu.memory_space<vmem>>, vector<8x128xf32>
    tpu.vector_store %arg3[%c0_23, %c0_24], %66 {strides = array<i32>} : memref<8x128xf32, #tpu.memory_space<vmem>>, vector<8x128xf32>,
    return
  }
  func.func @transform_0(%arg0: i32, %arg1: memref<5xi32, #tpu.memory_space<smem>>) -> (i32, i32) {
    %c0_i32 = arith.constant 0 : i32
    %c0_i32_0 = arith.constant 0 : i32
    %c0_i32_1 = arith.constant 0 : i32
    return %c0_i32, %c0_i32_0 : i32, i32
  }
  func.func @transform_1(%arg0: i32, %arg1: memref<5xi32, #tpu.memory_space<smem>>) -> (i32, i32) {
    %c0_i32 = arith.constant 0 : i32
    %c0_i32_0 = arith.constant 0 : i32
    %c0_i32_1 = arith.constant 0 : i32
    return %c0_i32, %c0_i32_0 : i32, i32
  }
}

</mosaic_0001>

<bundles_post_ra>
// kernel: dpcnn_forward.1
= control target key start
LH: loop header
LB: loop body
LE: loop exit
PB: predicated region body
PF: predicated region fallthrough
CT: control target
= control target key end

     0   :  { %s1084_s0 = inlined_call_operand.vmem [shape: s32[5], index: 0, kind: input, shape index: {}]   ;;  %s1085_s1 = inlined_call_operand.vmem [shape: f32[296,128], index: 1, kind: input, shape index: {}]   ;;  %s1086_s2 = inlined_call_operand.vmem [shape: f32[8,128], index: 2, kind: output, shape index: {}]  }
   0x1   :  { %s7_s11 = sshll.u32 %s1084_s0, 4  ;;  %s8_s11 = int_to_ptr.vmem [resolvable:$true] %s7_s11 }
   0x2   :  { %s857_s12 = scalar_lea.vmem %s8_s11, 16  ;;  %p862_p1 = scmp.lt.s32.totalorder %s8_s11, %s8_s11 }
   0x3   :  { %p858_p0 = scmp.ne.s32.totalorder %s8_s11, %s857_s12  ;;  %p863_p2 = scmp.lt.s32.totalorder %s857_s12, %s857_s12 }
   0x5   :  { %p864_p3 = por %p863_p2, %p862_p1 }
   0x7   :  { %p865_p4 = pnand %p864_p3, %p858_p0 }
   0x9   :  { %868 = shalt.err (!%p865_p4)  }
   0xa   :  { %s871_s13 = smov [#allocation3]  }
   0xb   :  { %10 = dma.vmem_to_smem %s8_s11, 16, %s871_s13, [#allocation2] }
   0xc   :  { %869 = dma.done.wait [#allocation2], 16 }
   0xd   :  { %870 = vsyncadd [#allocation2], 4294967280 }
   0xe   :  { %12 = sfence }
   0xf   :  { %s46_s14 = sld [smem:[#allocation3]]  ;;  %s600_s15 = sld [smem:[#allocation3 + $0x1]]  ;;  %v15_v0 = vld [vmem:[%s1085_s1 + $0x40] sm:$0xff]  ;;  %v16_v1 = vld [vmem:[%s1085_s1 + $0x48] sm:$0xff]  ;;  %v872_v2 = vmov 0.0|0.0   ;;  %v17_v4 = vld [vmem:[%s1085_s1 + $0x50] sm:$0xff] }
  0x10   :  { %s601_s16 = sld [smem:[#allocation3 + $0x2]]  ;;  %s602_s17 = sld [smem:[#allocation3 + $0x3]]  ;;  %779 = vmatprep.subr.bf16.mxu0 %v872_v2  ;;  %v780_v3 = vpack.c.bf16 %v16_v1, %v15_v0  ;;  %v18_v5 = vld [vmem:[%s1085_s1 + $0x58] sm:$0xff]  ;;  %797 = vmatprep.subr.bf16.mxu1 %v872_v2  ;;  %v19_v7 = vld [vmem:[%s1085_s1 + $0x60] sm:$0xff]  ;;  %v20_v8 = vld [vmem:[%s1085_s1 + $0x68] sm:$0xff]  ;;  %vm73_vm0 = vcmask 1040384  }
  0x11   :  { %s895_s18 = sld [smem:[#allocation3 + $0x4]]  ;;  %v783_v6 = vpack.c.bf16 %v18_v5, %v17_v4  ;;  %vm873_vm1 = vmmov 0   ;;  %v874_v11 = vmov 0.0   ;;  %vm75_vm2 = vcmask 1041408   ;;  %v21_v21 = vld [vmem:[%s1085_s1 + $0x70] sm:$0xff]  ;;  %v22_v22 = vld [vmem:[%s1085_s1 + $0x78] sm:$0xff] }
  0x12   :  { %781 = vmatpush3.bf16.msra.mxu0 %v780_v3  ;;  %689 = vmatprep.mubr.msk.f32.mxu0 %vm873_vm1, %v874_v11  ;;  %vm77_vm3 = vcmask 1042432   ;;  %v786_v18 = vpack.c.bf16 %v20_v8, %v19_v7  ;;  %vm79_vm4 = vcmask 1043456   ;;  %v789_v26 = vpack.c.bf16 %v22_v22, %v21_v21  ;;  %v23_v28 = vld [vmem:[%s1085_s1 + $0x80] sm:$0xff]  ;;  %v24_v29 = vld [vmem:[%s1085_s1 + $0x88] sm:$0xff]  ;;  %s875_s24 = smov 32   ;;  %v25_v32 = vld [vmem:[%s1085_s1 + $0x90] sm:$0xff] }
  0x13   :  { %782 = vmatprep.subr.bf16.mxu0 %v872_v2  ;;  %716 = vmatprep.mubr.msk.f32.mxu1 %vm873_vm1, %v874_v11  ;;  %v792_v31 = vpack.c.bf16 %v24_v29, %v23_v28  ;;  %v26_v33 = vld [vmem:[%s1085_s1 + $0x98] sm:$0xff]  ;;  %s876_s29 = smov 64   ;;  %vm90_vm5 = vcmask 261120   ;;  %vm92_vm6 = vcmask 523264   ;;  %vm98_vm7 = vcmask 785408   ;;  %v27_v39 = vld [vmem:[%s1085_s1 + $0xa0] sm:$0xff] }
  0x14   :  { %v795_v34 = vpack.c.bf16 %v26_v33, %v25_v32  ;;  %v28_v40 = vld [vmem:[%s1085_s1 + $0xa8] sm:$0xff]  ;;  %v29_v41 = vld [vmem:[%s1085_s1 + $0xb0] sm:$0xff]  ;;  %v30_v43 = vld [vmem:[%s1085_s1 + $0xb8] sm:$0xff]  ;;  %v189_v8 = vlaneseq  ;;  %vm356_vm8 = vcmask 256000  }
  0x15   :  { %s47_s28 = scalar_lea.vmem %s1085_s1, %s46_s14  ;;  %s50_s3 = scalar_lea.vmem %s1085_s1, %s600_s15  ;;  %v798_v42 = vpack.c.bf16 %v28_v40, %v27_v39  ;;  %v801_v44 = vpack.c.bf16 %v30_v43, %v29_v41  ;;  %v31_v45 = vld [vmem:[%s1085_s1 + $0xc0] sm:$0xff]  ;;  %v32_v46 = vld [vmem:[%s1085_s1 + $0xc8] sm:$0xff]  ;;  %v33_v48 = vld [vmem:[%s1085_s1 + $0xd0] sm:$0xff] }
  0x16   :  { %v48_v9 = vld [vmem:[%s47_s28] sm:$0x1]  ;;  %s53_s10 = scalar_lea.vmem %s1085_s1, %s601_s16  ;;  %s56_s13 = scalar_lea.vmem %s1085_s1, %s602_s17  ;;  %784 = vmatpush3.bf16.msra.mxu0 %v783_v6  ;;  %v990_v47 = vpack.c.bf16 %v32_v46, %v31_v45  ;;  %v34_v49 = vld [vmem:[%s1085_s1 + $0xd8] sm:$0xff]  ;;  %v36_v52 = vld [vmem:[%s1085_s1 + $0xe8] sm:$0xff] }
  0x17   :  { %v51_v10 = vld [vmem:[%s50_s3] sm:$0x1]  ;;  %s59_s0 = scalar_lea.vmem %s1085_s1, %s895_s18  ;;  %785 = vmatprep.subr.bf16.mxu0 %v872_v2  ;;  %799 = vmatpush3.bf16.msra.mxu1 %v798_v42  ;;  %v1001_v50 = vpack.c.bf16 %v34_v49, %v33_v48  ;;  %v37_v54 = vld [vmem:[%s1085_s1 + $0xf0] sm:$0xff]  ;;  %v38_v55 = vld [vmem:[%s1085_s1 + $0xf8] sm:$0xff] }
  0x18   :  { %v54_v12 = vld [vmem:[%s53_s10] sm:$0x1]  ;;  %v62_v14 = vrot.slane %v51_v10, 7  ;;  %800 = vmatprep.subr.bf16.mxu1 %v872_v2  ;;  %v813_v57 = vpack.c.bf16 %v38_v55, %v37_v54  ;;  %v40_v39 = vld [vmem:[%s1085_s1 + $0x108] sm:$0xff]  ;;  %v41_v45 = vld [vmem:[%s1085_s1 + $0x110] sm:$0xff] }
  0x19   :  { %v57_v13 = vld [vmem:[%s56_s13] sm:$0x1]  ;;  %v65_v16 = vrot.slane %v54_v12, 6  ;;  %v44_v12 = vld [vmem:[%s1085_s1 + $0x121] sm:$0x1]  ;;  %v42_v46 = vld [vmem:[%s1085_s1 + $0x118] sm:$0xff] }
  0x1a   :  { %v60_v15 = vld [vmem:[%s59_s0] sm:$0x1]  ;;  %v68_v17 = vrot.slane %v57_v13, 5  ;;  %v74_v20 = vsel %vm73_vm0, %v48_v9, %v62_v14  ;;  %787 = vmatpush3.bf16.msra.mxu0 %v786_v18  ;;  %v1041_v9 = vshrl.u32 %v189_v8, 7 }
  0x1b   :  { %v71_v19 = vrot.slane %v60_v15, 4  ;;  %v76_v23 = vsel %vm75_vm2, %v74_v20, %v65_v16  ;;  %788 = vmatprep.subr.bf16.mxu0 %v872_v2  ;;  %802 = vmatpush3.bf16.msra.mxu1 %v801_v44  ;;  %v35_v51 = vld [vmem:[%s1085_s1 + $0xe0] sm:$0xff] }
  0x1c   :  { %v78_v24 = vsel %vm77_vm3, %v76_v23, %v68_v17  ;;  %803 = vmatprep.subr.bf16.mxu1 %v872_v2  ;;  %v810_v53 = vpack.c.bf16 %v36_v52, %v35_v51  ;;  %v604_v56 = vld [vmem:[%s1085_s1 + $0x120] ss:$0 sm:$0xff]  ;;  %v191_v10 = vsub.s32 0, %v1041_v9 }
  0x1d   :  { %v80_v25 = vsel %vm79_vm4, %v78_v24, %v71_v19 }
  0x1e   :  { %v82_v27 = vrot.slane %v80_v25, 1  ;;  %v86_v30 = vrot.slane %v80_v25, 2  ;;  %790 = vmatpush3.bf16.msra.mxu0 %v789_v26  ;;  %v192_v13 = vrot.slane %v44_v12, %v191_v10 }
  0x1f   :  { %791 = vmatprep.subr.bf16.mxu0 %v872_v2  ;;  %805 = vmatpush3.bf16.msra.mxu1 %v990_v47 }
  0x20   :  { %83 = vrot.lane.b32.xlu0 %v82_v27, %s875_s24  ;;  %806 = vmatprep.subr.bf16.mxu1 %v872_v2 }
  0x22   :  { %793 = vmatpush3.bf16.msra.mxu0 %v792_v31 }
  0x23   :  { %794 = vmatprep.subr.bf16.mxu0 %v872_v2  ;;  %808 = vmatpush3.bf16.msra.mxu1 %v1001_v50 }
  0x24   :  { %87 = vrot.lane.b32.xlu0 %v86_v30, %s876_s29  ;;  %809 = vmatprep.subr.bf16.mxu1 %v872_v2 }
  0x26   :  { %796 = vmatpush3.bf16.msra.mxu0 %v795_v34 }
  0x27   :  { %815 = vmatprep.subr.bf16.mxu0 %v872_v2  ;;  %811 = vmatpush3.bf16.msra.mxu1 %v810_v53 }
  0x28   :  { %812 = vmatprep.subr.bf16.mxu1 %v872_v2 }
  0x2b   :  { %814 = vmatpush3.bf16.msra.mxu1 %v813_v57 }
  0x2c   :  { %833 = vmatprep.subr.bf16.mxu1 %v872_v2 }
  0x92   :  { %v84_v35 = vpop.permute.xlu0 %83 }
  0x93   :  { %v91_v36 = vsel %vm90_vm5, %v80_v25, %v84_v35 }
  0x96   :  { %v88_v37 = vpop.permute.xlu0 %87 }
  0x97   :  { %v93_v38 = vsel %vm92_vm6, %v91_v36, %v88_v37 }
  0x98   :  { %690 = vmatmul.mubr.msk.f32.vlgmr.msra.gmra.mrb[0].mxu0 %vm98_vm7, %v93_v38  ;;  %v39_v38 = vld [vmem:[%s1085_s1 + $0x100] sm:$0xff] }
  0x99   :  { %743 = vmatprep.mubr.msk.f32.mxu0 %vm873_vm1, %v874_v11  ;;  %817 = vmatpush3.bf16.msra.mxu0 %v798_v42  ;;  %v846_v43 = vpack.c.bf16 %v40_v39, %v39_v38 }
  0x9a   :  { %818 = vmatprep.subr.bf16.mxu0 %v872_v2 }
  0x9d   :  { %820 = vmatpush3.bf16.msra.mxu0 %v801_v44 }
  0x9e   :  { %821 = vmatprep.subr.bf16.mxu0 %v872_v2 }
  0xa1   :  { %823 = vmatpush3.bf16.msra.mxu0 %v990_v47 }
  0xa2   :  { %824 = vmatprep.subr.bf16.mxu0 %v872_v2 }
  0xa5   :  { %826 = vmatpush3.bf16.msra.mxu0 %v1001_v50 }
  0xa6   :  { %827 = vmatprep.subr.bf16.mxu0 %v872_v2 }
  0xa9   :  { %829 = vmatpush3.bf16.msra.mxu0 %v810_v53 }
  0xaa   :  { %830 = vmatprep.subr.bf16.mxu0 %v872_v2 }
  0xad   :  { %832 = vmatpush3.bf16.msra.mxu0 %v813_v57 }
 0x16b   :  { %v168_v58 = vpop.f32.mrb[0].mxu0 }
 0x16c   :  { %v169_v59 = vadd.f32 %v604_v56, %v168_v58  ;;  %v691_v60 = vpop.f32.mrb[1].mxu0 }
 0x16e   :  { %v172_v61 = vmax.f32 %v169_v59, 0.0 }
 0x170   :  { %v174_v62 = vrot.slane %v172_v61, 7 }
 0x172   :  { %v176_v63 = vsel %vm73_vm0, 0.0, %v174_v62 }
 0x173   :  { %v177_v0 = vsel %vm79_vm4, %v176_v63, 0.0 }
 0x174   :  { %v179_v1 = vrot.slane %v177_v0, 1  ;;  %v183_v3 = vrot.slane %v177_v0, 2 }
 0x176   :  { %180 = vrot.lane.b32.xlu1 %v179_v1, %s875_s24 }
 0x17a   :  { %184 = vrot.lane.b32.xlu1 %v183_v3, %s876_s29 }
 0x1e8   :  { %v181_v4 = vpop.permute.xlu1 %180 }
 0x1e9   :  { %v187_v5 = vsel %vm90_vm5, %v177_v0, %v181_v4 }
 0x1ec   :  { %v185_v6 = vpop.permute.xlu1 %184 }
 0x1ed   :  { %v188_v7 = vsel %vm92_vm6, %v187_v5, %v185_v6 }
 0x1ee   :  { %717 = vmatmul.mubr.msk.f32.vlgmr.msra.gmra.mrb[0].mxu1 %vm98_vm7, %v188_v7 }
 0x1ef   :  { %835 = vmatpush3.bf16.msra.mxu1 %v990_v47  ;;  %754 = vmatprep.mubr.msk.f32.mxu1 %vm873_vm1, %v874_v11 }
 0x1f0   :  { %836 = vmatprep.subr.bf16.mxu1 %v872_v2 }
 0x1f3   :  { %838 = vmatpush3.bf16.msra.mxu1 %v1001_v50 }
 0x1f4   :  { %839 = vmatprep.subr.bf16.mxu1 %v872_v2 }
 0x2c1   :  { %v262_v14 = vpop.f32.mrb[0].mxu1 }
 0x2c2   :  { %v263_v15 = vadd.f32 %v262_v14, %v192_v13  ;;  %v718_v16 = vpop.f32.mrb[1].mxu1 }
 0x2c4   :  { %v266_v17 = vmax.f32 %v263_v15, 0.0 }
 0x2c6   :  { %v268_v18 = vrot.slane %v266_v17, 7 }
 0x2c8   :  { %v270_v19 = vsel %vm73_vm0, 0.0, %v268_v18 }
 0x2c9   :  { %v271_v20 = vsel %vm79_vm4, %v270_v19, 0.0 }
 0x2ca   :  { %v277_v21 = vrot.slane %v271_v20, 2  ;;  %v273_v22 = vrot.slane %v271_v20, 1 }
 0x2cc   :  { %278 = vrot.lane.b32.xlu1 %v277_v21, %s876_s29  ;;  %274 = vrot.lane.b32.xlu0 %v273_v22, %s875_s24 }
 0x33e   :  { %v279_v23 = vpop.permute.xlu1 %278  ;;  %v275_v24 = vpop.permute.xlu0 %274 }
 0x33f   :  { %v281_v25 = vsel %vm90_vm5, %v271_v20, %v275_v24 }
 0x340   :  { %v282_v26 = vsel %vm92_vm6, %v281_v25, %v279_v23 }
 0x341   :  { %744 = vmatmul.mubr.msk.f32.vlgmr.msra.gmra.mrb[2].mxu0 %vm98_vm7, %v282_v26 }
 0x414   :  { %v352_v27 = vpop.f32.mrb[2].mxu0 }
 0x415   :  { %v353_v28 = vadd.f32 %v352_v27, %v192_v13  ;;  %v745_v29 = vpop.f32.mrb[3].mxu0 }
 0x417   :  { %v357_v30 = vsel %vm356_vm8, %v353_v28, -inf }
 0x418   :  { %v358_v31 = vrot.slane %v357_v30, 4 }
 0x41a   :  { %v359_v32 = vmax.f32 %v357_v30, %v358_v31 }
 0x41c   :  { %v360_v33 = vrot.slane %v359_v32, 2 }
 0x41e   :  { %v361_v34 = vmax.f32 %v359_v32, %v360_v33 }
 0x420   :  { %v362_v35 = vrot.slane %v361_v34, 1 }
 0x422   :  { %v363_v36 = vmax.f32 %v361_v34, %v362_v35 }
 0x424   :  { %v364_v37 = vmax.f32 %v363_v36, 0.0 }
 0x426   :  { %755 = vmatmul.mubr.msk.f32.vlgmr.msra.gmra.mrb[2].mxu1 %vm90_vm5, %v364_v37 }
 0x427   :  { %841 = vmatpush3.bf16.msra.mxu1 %v990_v47  ;;  %765 = vmatprep.mubr.msk.f32.mxu1 %vm873_vm1, %v874_v11  ;;  %v849_v47 = vpack.c.bf16 %v42_v46, %v41_v45 }
 0x428   :  { %842 = vmatprep.subr.bf16.mxu1 %v872_v2 }
 0x42b   :  { %844 = vmatpush3.bf16.msra.mxu1 %v1001_v50 }
 0x42c   :  { %845 = vmatprep.subr.bf16.mxu1 %v872_v2 }
 0x4f9   :  { %v434_v40 = vpop.f32.mrb[2].mxu1 }
 0x4fa   :  { %v435_v41 = vadd.f32 %v434_v40, %v44_v12  ;;  %v756_v42 = vpop.f32.mrb[3].mxu1 }
 0x4fc   :  { %v438_v44 = vmax.f32 %v435_v41, 0.0 }
 0x4fe   :  { %766 = vmatmul.mubr.msk.f32.vlgmr.msra.gmra.mrb[4].mxu1 %vm90_vm5, %v438_v44 }
 0x4ff   :  { %847 = vmatpush3.bf16.msra.mxu1 %v846_v43  ;;  %776 = vmatprep.mubr.msk.f32.mxu1 %vm873_vm1, %v874_v11 }
 0x500   :  { %848 = vmatprep.subr.bf16.mxu1 %v872_v2  ;;  %v45_v2 = vld [vmem:[%s1085_s1 + $0x122] sm:$0x1] }
 0x503   :  { %850 = vmatpush3.bf16.msra.mxu1 %v849_v47 }
 0x5d1   :  { %v508_v48 = vpop.f32.mrb[4].mxu1 }
 0x5d2   :  { %v509_v49 = vadd.f32 %v508_v48, %v44_v12  ;;  %v767_v50 = vpop.f32.mrb[5].mxu1 }
 0x5d4   :  { %v512_v51 = vadd.f32 %v509_v49, %v363_v36 }
 0x5d6   :  { %777 = vmatmul.mubr.msk.f32.vlgmr.msra.gmra.mrb[6].mxu1 %vm90_vm5, %v512_v51 }
 0x6a9   :  { %v582_v11 = vpop.f32.mrb[6].mxu1 }
 0x6aa   :  { %v583_v52 = vadd.f32 %v582_v11, %v45_v2  ;;  %v778_v53 = vpop.f32.mrb[7].mxu1 }
 0x6ac   :  { %v589_v54 = vrot.slane %v583_v52, %v191_v10 }
 0x6ae   :  { %590 = vst [vmem:[%s1086_s2] sm:$0xff] %v589_v54 }

</bundles_post_ra>
